<compile_context>
chip_gen: v7x
topology: tpu7x:2x2x1
jax: 0.10.0
libtpu: 0.0.40
codegen_flags: <defaults>
</compile_context>

<pallas_src>
import functools

import jax
import jax.numpy as jnp
from jax import lax
from jax.experimental import pallas as pl
from jax.experimental.pallas import tpu as pltpu


# ------------------------------ helpers -------------------------------------

def _round_up(x, m):
    return ((x + m - 1) // m) * m


@functools.lru_cache(maxsize=None)
def _conv_tiling():
    """(tm_base, vmem_limit_bytes), sized per TPU generation's VMEM."""
    try:
        vmem = pltpu.get_tpu_info().vmem_capacity_bytes
    except Exception:
        vmem = 64 * 1024 * 1024
    if vmem >= 100 * 1024 * 1024:          # v5e / v6e: 128 MiB VMEM
        return 1024, 80 * 1024 * 1024
    return 512, 40 * 1024 * 1024           # v7x: 64 MiB VMEM per TensorCore


# ----------------------------- Pallas kernels -------------------------------

def _conv_mm_kernel(p_ref, w_ref, b_ref, o_ref):
    """Tiled im2col matmul (bf16 MXU, f32 acc) + bias + ReLU."""
    acc = jnp.dot(p_ref[...], w_ref[...], preferred_element_type=jnp.float32)
    acc = acc + b_ref[...]
    o_ref[...] = jnp.maximum(acc, 0.0).astype(o_ref.dtype)


def _lpips_head_kernel(inv_hw, fx_ref, fy_ref, w_ref, o_ref, acc_ref):
    """Channel-normalize, squared diff, 1x1 'lin' weight, spatial mean.

    Grid runs over HW tiles; per-sample partial sums accumulate in VMEM.
    Blocks: fx/fy (N, thw, C) bf16, w (1, 1, C) f32, out (N, 1) f32.
    """
    @pl.when(pl.program_id(0) == 0)
    def _init():
        acc_ref[...] = jnp.zeros_like(acc_ref)

    fx = fx_ref[...].astype(jnp.float32)
    fy = fy_ref[...].astype(jnp.float32)
    inv_nx = pl.reciprocal(
        jnp.sqrt(jnp.sum(fx * fx, axis=2, keepdims=True)) + 1e-10, approx=True)
    inv_ny = pl.reciprocal(
        jnp.sqrt(jnp.sum(fy * fy, axis=2, keepdims=True)) + 1e-10, approx=True)
    d = (fx * inv_nx - fy * inv_ny) ** 2                        # (N, thw, C)
    s = jnp.sum(d * w_ref[...], axis=2)                         # (N, thw)
    acc_ref[...] += jnp.sum(s, axis=1, keepdims=True)           # (N, 1)
    o_ref[...] = acc_ref[...] * inv_hw


def _loss_kernel(perc_w, cb_w, x_ref, y_ref, p_ref, cb_ref,
                 loss_ref, quant_ref, nll_ref, rec_ref, ploss_ref):
    """L1 reconstruction reduction + perceptual/codebook scalar combine."""
    abs_mean = jnp.mean(jnp.abs(x_ref[...] - y_ref[...]))
    p_mean = jnp.mean(p_ref[...])
    cb_mean = jnp.mean(cb_ref[...])
    # mean(|x-y| + perc_w * p_loss broadcast over CHW) decomposes exactly:
    nll = abs_mean + perc_w * p_mean
    loss = nll + cb_w * cb_mean
    loss_ref[...] = jnp.broadcast_to(loss, (1, 1)).astype(jnp.float32)
    quant_ref[...] = jnp.broadcast_to(cb_mean, (1, 1)).astype(jnp.float32)
    nll_ref[...] = jnp.broadcast_to(nll, (1, 1)).astype(jnp.float32)
    rec_ref[...] = jnp.broadcast_to(nll, (1, 1)).astype(jnp.float32)
    ploss_ref[...] = jnp.broadcast_to(p_mean, (1, 1)).astype(jnp.float32)


def _perplexity_kernel(n_embed, idx_ref, perp_ref, cluster_ref):
    """one_hot -> avg_probs -> perplexity / cluster usage."""
    idx = idx_ref[...]                                          # (1, M) int32
    m = idx.shape[1]
    codes = lax.broadcasted_iota(jnp.int32, (n_embed, m), 0)    # (n_embed, M)
    onehot = (codes == idx).astype(jnp.float32)
    avg = jnp.sum(onehot, axis=1, keepdims=True) / float(m)     # (n_embed, 1)
    entropy = -jnp.sum(avg * jnp.log(avg + 1e-10))
    perp_ref[...] = jnp.broadcast_to(jnp.exp(entropy), (1, 1)).astype(jnp.float32)
    cluster_ref[...] = jnp.broadcast_to(
        jnp.sum((avg > 0).astype(jnp.int32)), (1, 1)).astype(jnp.int32)


# ------------------------------ JAX glue -------------------------------------

def conv3x3_relu(x, wmat, bvec):
    """NHWC 3x3 conv + ReLU via tiled im2col matmul.

    x:    (N, H, W, Cin)   f32 or bf16
    wmat: (Kpad, Cout)     bf16   (K = 9*Cin zero-padded to a 128 multiple)
    bvec: (1, Cout)        f32
    returns (N, H, W, Cout) bf16
    """
    n, h, wd, cin = x.shape
    k = cin * 9
    k_pad, cout = wmat.shape

    xp = jnp.pad(x, ((0, 0), (1, 1), (1, 1), (0, 0)))
    cols = [xp[:, dy:dy + h, dx:dx + wd, :] for dy in range(3) for dx in range(3)]
    patches = jnp.concatenate(cols, axis=-1).reshape(n * h * wd, k)
    if k_pad != k:
        patches = jnp.pad(patches, ((0, 0), (0, k_pad - k)))
    patches = patches.astype(jnp.bfloat16)

    m = n * h * wd
    tm_base, vmem_bytes = _conv_tiling()
    tm = tm_base if m >= tm_base else _round_up(m, 16)
    m_pad = _round_up(m, tm)
    if m_pad != m:
        patches = jnp.pad(patches, ((0, m_pad - m), (0, 0)))
    tn = min(256, cout)

    out = pl.pallas_call(
        _conv_mm_kernel,
        out_shape=jax.ShapeDtypeStruct((m_pad, cout), jnp.bfloat16),
        grid_spec=pltpu.PrefetchScalarGridSpec(
            num_scalar_prefetch=0,
            grid=(m_pad // tm, cout // tn),
            in_specs=[
                pl.BlockSpec((tm, k_pad), lambda i, j: (i, 0)),
                # weight tile constant in the M axis -> stays VMEM-resident
                pl.BlockSpec((k_pad, tn), lambda i, j: (0, j)),
                pl.BlockSpec((1, tn), lambda i, j: (0, j)),
            ],
            out_specs=pl.BlockSpec((tm, tn), lambda i, j: (i, j)),
        ),
        compiler_params=pltpu.CompilerParams(
            dimension_semantics=("parallel", "parallel"),
            vmem_limit_bytes=vmem_bytes),
    )(patches, wmat, bvec)

    if m_pad != m:
        out = out[:m]
    return out.reshape(n, h, wd, cout)


def maxpool2x2(x):
    """NHWC 2x2 max pool (stride 2)."""
    n, h, w, c = x.shape
    return jnp.max(x.reshape(n, h // 2, 2, w // 2, 2, c), axis=(2, 4))


# VGG16 feature-extractor conv plan (13 convs) and LPIPS slice boundaries.
_VGG_CFG = [(3, 64), (64, 64),
            (64, 128), (128, 128),
            (128, 256), (256, 256), (256, 256),
            (256, 512), (512, 512), (512, 512),
            (512, 512), (512, 512), (512, 512)]
_SLICE_ENDS = [2, 4, 7, 10, 13]       # relu1_2, relu2_2, relu3_3, relu4_3, relu5_3
_LIN_CHNS = [64, 128, 256, 512, 512]


def vgg_features(x_nhwc, vgg_mats):
    feats = []
    ci = 0
    x = x_nhwc
    for si, end in enumerate(_SLICE_ENDS):
        if si > 0:
            x = maxpool2x2(x)
        while ci < end:
            wmat, bvec = vgg_mats[ci]
            x = conv3x3_relu(x, wmat, bvec)
            ci += 1
        feats.append(x)
    return feats


def _lpips_head(fx, fy, lw, hw):
    """fx, fy: (N, HW, C) bf16; lw: (1, 1, C) f32 -> (N, 1) f32."""
    n, _, c = fx.shape
    if hw > 1024:
        thw = 1024
        hwp = _round_up(hw, thw)
        if hwp != hw:
            # zero-padded pixels normalize to 0 for both branches -> contribute 0
            pad = ((0, 0), (0, hwp - hw), (0, 0))
            fx = jnp.pad(fx, pad)
            fy = jnp.pad(fy, pad)
    else:
        thw, hwp = hw, hw
    _, vmem_bytes = _conv_tiling()

    return pl.pallas_call(
        functools.partial(_lpips_head_kernel, 1.0 / float(hw)),
        out_shape=jax.ShapeDtypeStruct((n, 1), jnp.float32),
        grid_spec=pltpu.PrefetchScalarGridSpec(
            num_scalar_prefetch=0,
            grid=(hwp // thw,),
            in_specs=[
                pl.BlockSpec((n, thw, c), lambda i: (0, i, 0)),
                pl.BlockSpec((n, thw, c), lambda i: (0, i, 0)),
                pl.BlockSpec((1, 1, c), lambda i: (0, 0, 0)),
            ],
            out_specs=pl.BlockSpec((n, 1), lambda i: (0, 0)),
            scratch_shapes=[pltpu.VMEM((n, 1), jnp.float32)],
        ),
        compiler_params=pltpu.CompilerParams(
            dimension_semantics=("arbitrary",),
            vmem_limit_bytes=vmem_bytes),
    )(fx, fy, lw)


def lpips_forward(x0, x1, vgg_mats, lin_weights):
    """Returns per-sample perceptual loss of shape (N, 1, 1, 1)."""
    n = x0.shape[0]
    shift = jnp.array([-0.030, -0.088, -0.188], jnp.float32).reshape(1, 3, 1, 1)
    scale = jnp.array([0.458, 0.448, 0.450], jnp.float32).reshape(1, 3, 1, 1)
    # Both branches through VGG in one batched pass (batch = 2N).
    x = jnp.concatenate([(x0 - shift) / scale, (x1 - shift) / scale], axis=0)
    x = jnp.transpose(x, (0, 2, 3, 1))                 # NCHW -> NHWC
    feats = vgg_features(x, vgg_mats)

    val = None
    for kk, f in enumerate(feats):
        b2, h, w, c = f.shape
        f = f.reshape(b2, h * w, c)
        fx, fy = f[:n], f[n:]
        lw = lin_weights[kk].reshape(1, 1, c)
        r = _lpips_head(fx, fy, lw, h * w)
        val = r if val is None else val + r
    return val.reshape(n, 1, 1, 1)


# --------------------------- ResidualVQLPIPS ---------------------------------

class ResidualVQLPIPSPallas:
    """no discriminator — forward-pass reimplementation with Pallas kernels."""

    def __init__(self, quantize_scale_weights, codebook_weight=1.0,
                 pixelloss_weight=1.0, perceptual_weight=1.0,
                 n_classes=None, n_scales=None, seed=0):
        if n_scales is not None:
            self.n_scales = n_scales
            assert len(quantize_scale_weights) == 1
            quantize_scale_weights = list(quantize_scale_weights) * self.n_scales
            assert len(n_classes) == 1
            n_classes = list(n_classes) * self.n_scales
        else:
            self.n_scales = len(quantize_scale_weights)
            quantize_scale_weights = list(quantize_scale_weights)
        self.quantize_weights = quantize_scale_weights
        self.codebook_weight = float(codebook_weight)
        self.pixel_weight = float(pixelloss_weight)   # stored, unused (matches reference)
        self.perceptual_weight = float(perceptual_weight)
        self.n_classes = n_classes

        # Deterministic synthetic LPIPS parameters (VGG16 convs + lin heads).
        # TODO(synk): real LPIPS uses pretrained VGG16 + learned lin weights;
        # here they are deterministically He-initialized (no checkpoint load).
        key = jax.random.PRNGKey(seed)
        self.vgg_mats = []     # per conv: (wmat bf16 (Kpad, Cout), bvec f32 (1, Cout))
        for (cin, cout) in _VGG_CFG:
            key, kw, kb = jax.random.split(key, 3)
            std = (2.0 / (cin * 9)) ** 0.5
            w = std * jax.random.normal(kw, (cout, cin, 3, 3), jnp.float32)
            b = 0.01 * jax.random.normal(kb, (cout,), jnp.float32)
            k = cin * 9
            k_pad = _round_up(k, 128)
            # im2col column order is (ky, kx, cin) -> weight matrix (K, Cout)
            wmat = jnp.transpose(w, (2, 3, 1, 0)).reshape(k, cout)
            if k_pad != k:
                wmat = jnp.pad(wmat, ((0, k_pad - k), (0, 0)))
            self.vgg_mats.append((wmat.astype(jnp.bfloat16),
                                  b.reshape(1, cout).astype(jnp.float32)))
        self.lin_weights = []
        for c in _LIN_CHNS:
            key, kl = jax.random.split(key)
            self.lin_weights.append(
                0.1 * jnp.abs(jax.random.normal(kl, (1, c, 1, 1), jnp.float32)))

    def forward(self, codebook_losses, inputs, reconstructions, global_step,
                split='train', predicted_indices=None):
        n, c, h, w = inputs.shape
        if self.perceptual_weight > 0:
            p_loss = lpips_forward(inputs, reconstructions,
                                   self.vgg_mats, self.lin_weights)  # (N,1,1,1)
            perc_w = self.perceptual_weight
        else:
            p_loss = jnp.zeros((1,), jnp.float32)
            perc_w = 0.0

        # Lane-dense layout for the elementwise L1 reduction: (N*C, H*W).
        x2d = inputs.reshape(n * c, h * w).astype(jnp.float32)
        y2d = reconstructions.reshape(n * c, h * w).astype(jnp.float32)
        p2d = p_loss.reshape(-1, 1).astype(jnp.float32)
        cb2d = jnp.asarray(codebook_losses, jnp.float32).reshape(1, -1)

        outs = pl.pallas_call(
            functools.partial(_loss_kernel, perc_w, self.codebook_weight),
            out_shape=tuple(jax.ShapeDtypeStruct((1, 1), jnp.float32)
                            for _ in range(5)),
        )(x2d, y2d, p2d, cb2d)
        loss, quant_loss, nll_loss, rec_loss_mean, p_loss_mean = [o[0, 0] for o in outs]

        log = {
            f'{split}/total_loss': loss,
            f'{split}/quant_loss': quant_loss,
            f'{split}/nll_loss': nll_loss,
            f'{split}/rec_loss': rec_loss_mean,
            f'{split}/p_loss': p_loss_mean,
        }

        if predicted_indices is not None:
            assert self.n_classes is not None
            assert len(predicted_indices) == len(self.n_classes)
            for i, (indices, n_classes) in enumerate(
                    zip(predicted_indices, self.n_classes)):
                idx2d = jnp.asarray(indices, jnp.int32).reshape(1, -1)
                perp, cluster = pl.pallas_call(
                    functools.partial(_perplexity_kernel, int(n_classes)),
                    out_shape=(jax.ShapeDtypeStruct((1, 1), jnp.float32),
                               jax.ShapeDtypeStruct((1, 1), jnp.int32)),
                )(idx2d)
                log[f'{split}/perplexity_{i}'] = perp[0, 0]
                log[f'{split}/cluster_usage_{i}'] = cluster[0, 0]

        return loss, log


# --------------------------------- main ---------------------------------------

if __name__ == "__main__":
    key = jax.random.PRNGKey(0)
    k1, k2, k3, k4, k5 = jax.random.split(key, 5)

    N, C, H, W = 2, 3, 16, 16
    inputs = jax.random.normal(k1, (N, C, H, W), jnp.float32)
    reconstructions = inputs + 0.1 * jax.random.normal(k2, (N, C, H, W), jnp.float32)
    codebook_losses = jax.random.uniform(k3, (2,), jnp.float32)
    predicted_indices = [
        jax.random.randint(k4, (64,), 0, 512, jnp.int32),
        jax.random.randint(k5, (64,), 0, 512, jnp.int32),
    ]

    mod = ResidualVQLPIPSPallas(
        quantize_scale_weights=[1.0],
        codebook_weight=1.0,
        pixelloss_weight=1.0,
        perceptual_weight=1.0,
        n_classes=[512],
        n_scales=2,
    )

    loss, log = mod.forward(codebook_losses, inputs, reconstructions,
                            global_step=0, split='train',
                            predicted_indices=predicted_indices)
    jax.block_until_ready(loss)
    jax.block_until_ready(log)
    print("KERNEL_OK")
</pallas_src>

<mosaic_0001>
module attributes {stable_mosaic.version = 11 : i64} {
  func.func @_conv_mm_kernel(%arg0: i32, %arg1: i32, %arg2: memref<512x128xbf16, #tpu.memory_space<vmem>>, %arg3: memref<128x64xbf16, #tpu.memory_space<vmem>>, %arg4: memref<1x64xf32, #tpu.memory_space<vmem>>, %arg5: memref<512x64xbf16, #tpu.memory_space<vmem>>) attributes {dimension_semantics = [#tpu.dimension_semantics<parallel>, #tpu.dimension_semantics<parallel>], iteration_bounds = array<i64: 2, 1>, scalar_prefetch = 0 : i64, scratch_operands = 0 : i64, tpu.core_type = #tpu.core_type<tc>, window_params = [{transform_indices = @transform_0, window_bounds = array<i64: 512, 128>}, {transform_indices = @transform_1, window_bounds = array<i64: 128, 64>}, {transform_indices = @transform_2, window_bounds = array<i64: 1, 64>}, {transform_indices = @transform_3, window_bounds = array<i64: 512, 64>}]} {
    %c0 = arith.constant 0 : index
    %c0_0 = arith.constant 0 : index
    %0 = vector.load %arg2[%c0, %c0_0] : memref<512x128xbf16, #tpu.memory_space<vmem>>, vector<512x128xbf16>
    %c0_1 = arith.constant 0 : index
    %c0_2 = arith.constant 0 : index
    %1 = vector.load %arg3[%c0_1, %c0_2] : memref<128x64xbf16, #tpu.memory_space<vmem>>, vector<128x64xbf16>
    %cst = arith.constant dense<0.000000e+00> : vector<512x64xf32>
    %2 = tpu.matmul %0, %1, %cst {dimension_numbers = #tpu.dot_dimension_numbers<[1], [0], [0], [1], [0, 0, 1, 1], [], []>} : vector<512x128xbf16>, vector<128x64xbf16>, vector<512x64xf32> -> vector<512x64xf32>
    %c0_3 = arith.constant 0 : index
    %c0_4 = arith.constant 0 : index
    %3 = vector.load %arg4[%c0_3, %c0_4] : memref<1x64xf32, #tpu.memory_space<vmem>>, vector<1x64xf32>
    %4 = vector.broadcast %3 : vector<1x64xf32> to vector<512x64xf32>
    %5 = arith.addf %2, %4 : vector<512x64xf32>
    %cst_5 = arith.constant 0.000000e+00 : f32
    %6 = vector.broadcast %cst_5 : f32 to vector<512x64xf32>
    %7 = arith.maximumf %5, %6 : vector<512x64xf32>
    %8 = arith.truncf %7 : vector<512x64xf32> to vector<512x64xbf16>
    %c0_6 = arith.constant 0 : index
    %c0_7 = arith.constant 0 : index
    %9 = vector.load %arg5[%c0_6, %c0_7] : memref<512x64xbf16, #tpu.memory_space<vmem>>, vector<512x64xbf16>
    tpu.vector_store %arg5[%c0_6, %c0_7], %8 {strides = array<i32>} : memref<512x64xbf16, #tpu.memory_space<vmem>>, vector<512x64xbf16>,
    return
  }
  func.func @transform_0(%arg0: i32, %arg1: i32) -> (i32, i32) {
    %c0_i32 = arith.constant 0 : i32
    %c0_i32_0 = arith.constant 0 : i32
    return %arg0, %c0_i32 : i32, i32
  }
  func.func @transform_1(%arg0: i32, %arg1: i32) -> (i32, i32) {
    %c0_i32 = arith.constant 0 : i32
    %c0_i32_0 = arith.constant 0 : i32
    return %c0_i32, %arg1 : i32, i32
  }
  func.func @transform_2(%arg0: i32, %arg1: i32) -> (i32, i32) {
    %c0_i32 = arith.constant 0 : i32
    %c0_i32_0 = arith.constant 0 : i32
    return %c0_i32, %arg1 : i32, i32
  }
  func.func @transform_3(%arg0: i32, %arg1: i32) -> (i32, i32) {
    %c0_i32 = arith.constant 0 : i32
    return %arg0, %arg1 : i32, i32
  }
}

</mosaic_0001>

<bundles_post_ra>
// kernel: tpu_custom_call.1
= control target key start
LH: loop header
LB: loop body
LE: loop exit
PB: predicated region body
PF: predicated region fallthrough
CT: control target
= control target key end

     0   :  { %8 = vsyncpa [#allocation3], 0  ;;  %s2262_s0 = inlined_call_operand.hbm [shape: bf16[1024,128], index: 0, kind: input, shape index: {}]   ;;  %s2263_s1 = inlined_call_operand.vmem [shape: bf16[128,64], index: 1, kind: input, shape index: {}]   ;;  %s2264_s2 = inlined_call_operand.vmem [shape: f32[1,64], index: 2, kind: input, shape index: {}]   ;;  %s2265_s3 = inlined_call_operand.vmem [shape: bf16[1024,64], index: 3, kind: output, shape index: {}]  }
   0x1   :  { %10 = vsyncpa [#allocation3 + $0x1], 0  ;;  %s1882_s12 = smov 0   ;;  %s1884_s13 = smov 0  }
   0x2   :  { %s1886_s14 = smov 0   ;;  %s1888_s15 = smov 0  }
   0x3   :  { %s1890_s16 = smov 0   ;;  %s1892_s17 = smov 0  }
   0x4 LB: > { %s1359_s18 = sadd.s32 4294967295, %s1857_s17   ;;  %s28_s19 = sadd.s32 1, %s1853_s16  ;;  %s1857_s17 = sphi %s1892_s17, %s16_s17   ;;  %s1853_s16 = sphi %s1890_s16, %s2273_s16   ;;  %s1849_s15 = sphi %s1888_s15, %s2272_s15   ;;  %s1845_s14 = sphi %s1886_s14, %s2271_s14   ;;  %s1841_s13 = sphi %s1884_s13, %s2270_s13   ;;  %s1837_s12 = sphi %s1882_s12, %s2269_s12  }
   0x5   : > { %p30_p0 = scmp.ge.s32.totalorder %s28_s19, 2  ;;  %s35_s20 = sadd.s32 1, %s1845_s14 }
   0x6   : > { %p42_p1 = scmp.ne.s32.totalorder %s1845_s14, %s1841_s13  ;;  %p43_p2 = scmp.eq.s32.totalorder %s1857_s17, 0 }
   0x7   : > { %s2275_s19 = smov (%p30_p0, %s28_s19), 0  ;;  %p48_p4 = scmp.ne.s32.totalorder %s1841_s13, %s1837_s12 }
   0x8   : > { %p1918_p3 = por %p43_p2, %p42_p1  ;;  %s32_s22 = ssub.s32 %s1853_s16, %s2275_s19 }
   0x9   : > { %p49_p5 = scmp.eq.s32.totalorder %s1359_s18, 0  ;;  %p33_p6 = scmp.eq.s32.totalorder %s32_s22, 0 }
   0xa   : > { %p1686_p8 = scmp.lt.s32.totalorder %s1857_s17, 2  ;;  %s165_s25 = sand.u32 1, %s1845_s14  }
   0xb   : > { %p1925_p7 = por %p49_p5, %p48_p4  ;;  %s1479_s26 = sshll.u32 %s1853_s16, 12 }
   0xc   : > { %s1931_s24 = scalar_select %p33_p6, %s1845_s14, %s35_s20  }
   0xd   : > { %s1365_s27 = sshll.u32 %s165_s25, 8  ;;  %s1938_s30 = scalar_lea.hbm %s2262_s0, %s1479_s26 }
   0xe   : > { %s169_s4 = scalar_lea.vmem [#allocation2], %s1365_s27  ;;  %p1942_p9 = pnand %p1686_p8, %p1918_p3 }
   0xf   : > { %s176_s5 = sshll.u32 %s169_s4, 4  ;;  %s1948_s7 = scalar_lea.sflag [#allocation3], %s165_s25  ;;  %s1946_s5 = int_to_ptr.vmem [resolvable:$true] %s176_s5 }
  0x10   : > { %s1777_s8 = scalar_lea.hbm %s1938_s30, 4096  ;;  %p1779_p11 = pneg %p1942_p9 }
  0x11   : > { %p1778_p10 = scmp.ne.s32.totalorder %s1938_s30, %s1777_s8  ;;  %s1782_s11 = scalar_lea.hbm %s2262_s0, 8192 }
  0x12   : > { %p1783_p0 = scmp.lt.u32.totalorder %s1938_s30, %s2262_s0  ;;  %p1784_p1 = scmp.lt.u32.totalorder %s1782_s11, %s1777_s8 }
  0x13   : > { %p1780_p12 = pnand %p1779_p11, %p1778_p10  ;;  %p1786_p3 = scmp.lt.u32.totalorder %s1777_s8, %s1938_s30 }
  0x14   : > { %p1785_p2 = por %p1784_p1, %p1783_p0 }
  0x15   : > { %p1781_p13 = pneg %p1780_p12 }
  0x16   : > { %p1787_p4 = por %p1786_p3, %p1785_p2 }
  0x18   : > { %p1788_p5 = pnand %p1787_p4, %p1781_p13 }
  0x1a   : > { %1791 = shalt.err (!%p1788_p5)
}
  0x1b   : > { %s1792_s20 = scalar_lea.vmem %s1946_s5, 4096  ;;  %s1859_s21 = smov [#allocation2]  }
  0x1c   : > { %p1793_p6 = scmp.ne.s32.totalorder %s1946_s5, %s1792_s20  ;;  %s1797_s22 = sshll.u32 %s1859_s21, 4  ;;  %s1798_s22 = int_to_ptr.vmem [resolvable:$false] %s1797_s22 }
  0x1d   : > { %s1799_s25 = scalar_lea.vmem %s1798_s22, 8192  ;;  %p1800_p12 = scmp.lt.s32.totalorder %s1946_s5, %s1798_s22 }
  0x1e   : > { %p1795_p8 = pnand %p1793_p6, %p1779_p11  ;;  %p1801_p0 = scmp.lt.s32.totalorder %s1799_s25, %s1792_s20 }
  0x20   : > { %p1796_p10 = pneg %p1795_p8  ;;  %p1802_p1 = por %p1801_p0, %p1800_p12 }
  0x22   : > { %p1803_p2 = pnand %p1802_p1, %p1796_p10 }
  0x24   : > { %1806 = shalt.err (!%p1803_p2)
}
  0x25   : > { %s1860_s26 = smov 64   ;;  %s1861_s27 = smov 4  }
  0x26   : > { %1685 = dma.hbm_to_vmem [thread:$0]  (!%p1942_p9), %s1938_s30, 4096, %s1946_s5, %s1948_s7, %s1860_s26, %s1860_s26, %s1861_s27  }
  0x27   : > { %p1368_p11 = scmp.ge.s32.totalorder %s1857_s17, 1  ;;  %p184_p13 = scmp.lt.s32.totalorder %s1857_s17, 3 }
  0x29   : > { %p185_p3 = pnand %p1368_p11, %p184_p13 }
  0x2a   : > { %s190_s28 = sand.u32 (!%p185_p3), 1, %s1841_s13  }
  0x2b   : > { %188 = sbr.rel (%p185_p3) target bundleno = 362 (0x16a), region = 32  ;;  %s1369_s29 = sshll.u32 (!%p185_p3), %s190_s28, 8 }
  0x2c   : > { %s191_s4 = scalar_lea.sflag (!%p185_p3), [#allocation3], %s190_s28  ;;  %s1979_s8 = scalar_lea.vmem (!%p185_p3), [#allocation2], %s1369_s29 }
  0x32   : > { %1832 = dma.done.wait (%p1925_p7), %s191_s4, 4096  }
  0x33   : > { %1834 = vsyncadd (%p1925_p7), %s191_s4, 4294963200  ;;  %v1737_v0 = vld [vmem:[%s2263_s1] sm:$0xff]   ;;  %v1738_v1 = vld [vmem:[%s2263_s1 + $0x8] sm:$0xff]   ;;  %s1370_s28 = sshll.u32 %s1849_s15, 6  ;;  %vm1181_vm0 = vcmask 519168  }
  0x34   : > { %1584 = vmatprep.subr.bf16.mxu0 %v1737_v0  ;;  %1664 = vmatprep.subr.bf16.mxu1 %v1737_v0  ;;  %v1739_v2 = vld [vmem:[%s2263_s1 + $0x10] sm:$0xff]   ;;  %v1740_v3 = vld [vmem:[%s2263_s1 + $0x18] sm:$0xff]   ;;  %v1745_v4 = vld [vmem:[%s1979_s8] sm:$0xff]   ;;  %p236_p7 = scmp.lt.s32.totalorder %s1370_s28, 127 }
  0x35   : > { %1585 = vmatpush3.bf16.msra.mxu0 %v1737_v0  ;;  %1672 = vmatpush3.bf16.msra.mxu1 %v1737_v0  ;;  %v1746_v5 = vld [vmem:[%s1979_s8 + $0x80] sm:$0xff]   ;;  %v1742_v7 = vld [vmem:[%s2263_s1 + $0x28] sm:$0xff]   ;;  %v1743_v8 = vld [vmem:[%s2263_s1 + $0x30] sm:$0xff]  }
  0x36   : > { %1586 = vmatprep.subr.bf16.mxu0 %v1738_v1  ;;  %1665 = vmatprep.subr.bf16.mxu1 %v1738_v1  ;;  %v1741_v6 = vld [vmem:[%s2263_s1 + $0x20] sm:$0xff]   ;;  %v1744_v9 = vld [vmem:[%s2263_s1 + $0x38] sm:$0xff]   ;;  %v1747_v10 = vld [vmem:[%s1979_s8 + $0x8] sm:$0xff]   ;;  %s2277_s28 = smov (!%p236_p7, %s1370_s28), 127 }
  0x37   : > { %1600 = vmatprep.mubr.bf16.mxu0 %v1745_v4  ;;  %1632 = vmatprep.mubr.bf16.mxu1 %v1746_v5  ;;  %v1748_v11 = vld [vmem:[%s1979_s8 + $0x88] sm:$0xff]   ;;  %v1749_v12 = vld [vmem:[%s1979_s8 + $0x10] sm:$0xff]   ;;  %v1751_v14 = vld [vmem:[%s1979_s8 + $0x18] sm:$0xff]   ;;  %s1371_s9 = sshll.u32 %s2277_s28, 2 }
  0x38   : > { %v1750_v13 = vld [vmem:[%s1979_s8 + $0x90] sm:$0xff]   ;;  %v1752_v15 = vld [vmem:[%s1979_s8 + $0x98] sm:$0xff]   ;;  %v1753_v16 = vld [vmem:[%s1979_s8 + $0x20] sm:$0xff]   ;;  %s2056_s10 = scalar_lea.vmem %s2265_s3, %s1371_s9 }
  0x39   : > { %1587 = vmatpush3.bf16.msra.mxu0 %v1738_v1  ;;  %1673 = vmatpush3.bf16.msra.mxu1 %v1738_v1  ;;  %v1754_v17 = vld [vmem:[%s1979_s8 + $0xa0] sm:$0xff]   ;;  %v1755_v18 = vld [vmem:[%s1979_s8 + $0x28] sm:$0xff]   ;;  %v1757_v20 = vld [vmem:[%s1979_s8 + $0x30] sm:$0xff]  }
  0x3a   : > { %1588 = vmatprep.subr.bf16.mxu0 %v1739_v2  ;;  %1666 = vmatprep.subr.bf16.mxu1 %v1739_v2  ;;  %v1756_v19 = vld [vmem:[%s1979_s8 + $0xa8] sm:$0xff]   ;;  %v1758_v21 = vld [vmem:[%s1979_s8 + $0xb0] sm:$0xff]   ;;  %v1759_v22 = vld [vmem:[%s1979_s8 + $0x38] sm:$0xff]  }
  0x3b   : > { %v1760_v23 = vld [vmem:[%s1979_s8 + $0xb8] sm:$0xff]   ;;  %v1761_v24 = vld [vmem:[%s1979_s8 + $0x40] sm:$0xff]   ;;  %v1763_v26 = vld [vmem:[%s1979_s8 + $0x48] sm:$0xff]  }
  0x3c   : > { %v1762_v25 = vld [vmem:[%s1979_s8 + $0xc0] sm:$0xff]   ;;  %v1764_v27 = vld [vmem:[%s1979_s8 + $0xc8] sm:$0xff]   ;;  %v1765_v28 = vld [vmem:[%s1979_s8 + $0x50] sm:$0xff]  }
  0x3d   : > { %1589 = vmatpush3.bf16.msra.mxu0 %v1739_v2  ;;  %1674 = vmatpush3.bf16.msra.mxu1 %v1739_v2  ;;  %v1766_v29 = vld [vmem:[%s1979_s8 + $0xd0] sm:$0xff]   ;;  %v1767_v30 = vld [vmem:[%s1979_s8 + $0x58] sm:$0xff]   ;;  %v1769_v32 = vld [vmem:[%s1979_s8 + $0x60] sm:$0xff]  }
  0x3e   : > { %1590 = vmatprep.subr.bf16.mxu0 %v1740_v3  ;;  %1667 = vmatprep.subr.bf16.mxu1 %v1740_v3  ;;  %v1768_v31 = vld [vmem:[%s1979_s8 + $0xd8] sm:$0xff]   ;;  %v1770_v33 = vld [vmem:[%s1979_s8 + $0xe0] sm:$0xff]   ;;  %v1771_v34 = vld [vmem:[%s1979_s8 + $0x68] sm:$0xff]  }
  0x3f   : > { %v1772_v35 = vld [vmem:[%s1979_s8 + $0xe8] sm:$0xff]   ;;  %v1773_v36 = vld [vmem:[%s1979_s8 + $0x70] sm:$0xff]   ;;  %v1775_v38 = vld [vmem:[%s1979_s8 + $0x78] sm:$0xff]  }
  0x40   : > { %v1774_v37 = vld [vmem:[%s1979_s8 + $0xf0] sm:$0xff]   ;;  %v1776_v39 = vld [vmem:[%s1979_s8 + $0xf8] sm:$0xff]   ;;  %v2045_v40 = vld [vmem:[%s2264_s2] ss:$0 sm:$0xff] }
  0x41   : > { %1591 = vmatpush3.bf16.msra.mxu0 %v1740_v3  ;;  %1675 = vmatpush3.bf16.msra.mxu1 %v1740_v3 }
  0x42   : > { %1592 = vmatprep.subr.bf16.mxu0 %v1741_v6  ;;  %1668 = vmatprep.subr.bf16.mxu1 %v1741_v6 }
  0x45   : > { %1593 = vmatpush3.bf16.msra.mxu0 %v1741_v6  ;;  %1676 = vmatpush3.bf16.msra.mxu1 %v1741_v6 }
  0x46   : > { %1594 = vmatprep.subr.bf16.mxu0 %v1742_v7  ;;  %1669 = vmatprep.subr.bf16.mxu1 %v1742_v7 }
  0x49   : > { %1595 = vmatpush3.bf16.msra.mxu0 %v1742_v7  ;;  %1677 = vmatpush3.bf16.msra.mxu1 %v1742_v7 }
  0x4a   : > { %1596 = vmatprep.subr.bf16.mxu0 %v1743_v8  ;;  %1670 = vmatprep.subr.bf16.mxu1 %v1743_v8 }
  0x4d   : > { %1597 = vmatpush3.bf16.msra.mxu0 %v1743_v8  ;;  %1678 = vmatpush3.bf16.msra.mxu1 %v1743_v8 }
  0x4e   : > { %1598 = vmatprep.subr.bf16.mxu0 %v1744_v9  ;;  %1671 = vmatprep.subr.bf16.mxu1 %v1744_v9 }
  0x51   : > { %1599 = vmatpush3.bf16.msra.mxu0 %v1744_v9  ;;  %1679 = vmatpush3.bf16.msra.mxu1 %v1744_v9 }
  0x54   : > { %1601 = vmatmul.mubr.bf16.vlgmr.msra.gmra.mrb[0].mxu0 %v1747_v10  ;;  %1633 = vmatmul.mubr.bf16.vlgmr.msra.gmra.mrb[0].mxu1 %v1748_v11 }
  0x55   : > { %1604 = vmatprep.mubr.bf16.mxu0 %v1749_v12  ;;  %1636 = vmatprep.mubr.bf16.mxu1 %v1750_v13 }
  0x5c   : > { %1605 = vmatmul.mubr.bf16.gmra.mrb[4].mxu0 %v1751_v14  ;;  %1637 = vmatmul.mubr.bf16.gmra.mrb[4].mxu1 %v1752_v15 }
  0x5d   : > { %1608 = vmatprep.mubr.bf16.mxu0 %v1753_v16  ;;  %1640 = vmatprep.mubr.bf16.mxu1 %v1754_v17 }
  0x64   : > { %1609 = vmatmul.mubr.bf16.gmra.mrb[8].mxu0 %v1755_v18  ;;  %1641 = vmatmul.mubr.bf16.gmra.mrb[8].mxu1 %v1756_v19 }
  0x65   : > { %1612 = vmatprep.mubr.bf16.mxu0 %v1757_v20  ;;  %1644 = vmatprep.mubr.bf16.mxu1 %v1758_v21 }
  0x6c   : > { %1613 = vmatmul.mubr.bf16.gmra.mrb[12].mxu0 %v1759_v22  ;;  %1645 = vmatmul.mubr.bf16.gmra.mrb[12].mxu1 %v1760_v23 }
  0x6d   : > { %1616 = vmatprep.mubr.bf16.mxu0 %v1761_v24  ;;  %1648 = vmatprep.mubr.bf16.mxu1 %v1762_v25 }
  0x74   : > { %1617 = vmatmul.mubr.bf16.gmra.mrb[16].mxu0 %v1763_v26  ;;  %1649 = vmatmul.mubr.bf16.gmra.mrb[16].mxu1 %v1764_v27 }
  0x75   : > { %1620 = vmatprep.mubr.bf16.mxu0 %v1765_v28  ;;  %1652 = vmatprep.mubr.bf16.mxu1 %v1766_v29 }
  0x7c   : > { %1621 = vmatmul.mubr.bf16.gmra.mrb[20].mxu0 %v1767_v30  ;;  %1653 = vmatmul.mubr.bf16.gmra.mrb[20].mxu1 %v1768_v31 }
  0x7d   : > { %1624 = vmatprep.mubr.bf16.mxu0 %v1769_v32  ;;  %1656 = vmatprep.mubr.bf16.mxu1 %v1770_v33 }
  0x84   : > { %1625 = vmatmul.mubr.bf16.gmra.mrb[24].mxu0 %v1771_v34  ;;  %1657 = vmatmul.mubr.bf16.gmra.mrb[24].mxu1 %v1772_v35 }
  0x85   : > { %1628 = vmatprep.mubr.bf16.mxu0 %v1773_v36  ;;  %1660 = vmatprep.mubr.bf16.mxu1 %v1774_v37 }
  0x8c   : > { %1629 = vmatmul.mubr.bf16.gmra.mrb[28].mxu0 %v1775_v38  ;;  %1661 = vmatmul.mubr.bf16.gmra.mrb[28].mxu1 %v1776_v39 }
 0x127   : > { %v1602_v41 = vpop.f32.mrb[0].mxu0  ;;  %v1634_v42 = vpop.f32.mrb[0].mxu1 }
 0x128   : > { %v615_v43 = vadd.f32 %v1602_v41, %v2045_v40  ;;  %v743_v44 = vadd.f32 %v1634_v42, %v2045_v40  ;;  %v606_v45 = vpop.f32.mrb[1].mxu0  ;;  %v734_v46 = vpop.f32.mrb[1].mxu1 }
 0x129   : > { %v607_v47 = vadd.f32 %v2045_v40, %v606_v45  ;;  %v735_v48 = vadd.f32 %v2045_v40, %v734_v46  ;;  %v1603_v49 = vpop.f32.mrb[2].mxu0  ;;  %v1635_v50 = vpop.f32.mrb[2].mxu1 }
 0x12a   : > { %v863_v51 = vmax.f32 %v615_v43, 0.0  ;;  %v895_v52 = vmax.f32 %v743_v44, 0.0  ;;  %v618_v53 = vadd.f32 %v1603_v49, %v2045_v40  ;;  %v746_v54 = vadd.f32 %v1635_v50, %v2045_v40  ;;  %v609_v55 = vpop.f32.mrb[3].mxu0  ;;  %v737_v56 = vpop.f32.mrb[3].mxu1 }
 0x12b   : > { %v861_v57 = vmax.f32 %v607_v47, 0.0  ;;  %v893_v58 = vmax.f32 %v735_v48, 0.0  ;;  %v610_v59 = vadd.f32 %v2045_v40, %v609_v55  ;;  %v738_v60 = vadd.f32 %v2045_v40, %v737_v56 }
 0x12c   : > { %v1482_v61 = vpack.c.bf16 %v863_v51, %v863_v51  ;;  %v1514_v62 = vpack.c.bf16 %v895_v52, %v895_v52  ;;  %v864_v63 = vmax.f32 %v618_v53, 0.0  ;;  %v896_v0 = vmax.f32 %v746_v54, 0.0 }
 0x12d   : > { %v1480_v1 = vpack.c.bf16 %v861_v57, %v861_v57  ;;  %v1512_v2 = vpack.c.bf16 %v893_v58, %v893_v58  ;;  %v862_v3 = vmax.f32 %v610_v59, 0.0  ;;  %v894_v4 = vmax.f32 %v738_v60, 0.0 }
 0x12e   : > { %1184 = vst.msk [vmem:[%s2056_s10 + $0x8] sm:$0xf] %vm1181_vm0, %v1482_v61  ;;  %1216 = vst.msk [vmem:[%s2056_s10 + $0x88] sm:$0xf] %vm1181_vm0, %v1514_v62  ;;  %v1483_v5 = vpack.c.bf16 %v864_v63, %v864_v63  ;;  %v1515_v6 = vpack.c.bf16 %v896_v0, %v896_v0 }
 0x12f   : > { %1182 = vst.msk [vmem:[%s2056_s10] sm:$0xf] %vm1181_vm0, %v1480_v1  ;;  %1214 = vst.msk [vmem:[%s2056_s10 + $0x80] sm:$0xf] %vm1181_vm0, %v1512_v2  ;;  %v1481_v7 = vpack.c.bf16 %v862_v3, %v862_v3  ;;  %v1513_v8 = vpack.c.bf16 %v894_v4, %v894_v4  ;;  %v1606_v9 = vpop.f32.mrb[4].mxu0  ;;  %v1638_v10 = vpop.f32.mrb[4].mxu1 }
 0x130   : > { %1185 = vst.msk [vmem:[%s2056_s10 + $0xc] sm:$0xf] %vm1181_vm0, %v1483_v5  ;;  %1217 = vst.msk [vmem:[%s2056_s10 + $0x8c] sm:$0xf] %vm1181_vm0, %v1515_v6  ;;  %v631_v11 = vadd.f32 %v1606_v9, %v2045_v40  ;;  %v759_v12 = vadd.f32 %v1638_v10, %v2045_v40  ;;  %v622_v13 = vpop.f32.mrb[5].mxu0  ;;  %v750_v14 = vpop.f32.mrb[5].mxu1 }
 0x131   : > { %1183 = vst.msk [vmem:[%s2056_s10 + $0x4] sm:$0xf] %vm1181_vm0, %v1481_v7  ;;  %1215 = vst.msk [vmem:[%s2056_s10 + $0x84] sm:$0xf] %vm1181_vm0, %v1513_v8  ;;  %v623_v15 = vadd.f32 %v2045_v40, %v622_v13  ;;  %v751_v16 = vadd.f32 %v2045_v40, %v750_v14  ;;  %v1607_v17 = vpop.f32.mrb[6].mxu0  ;;  %v1639_v18 = vpop.f32.mrb[6].mxu1 }
 0x132   : > { %v867_v19 = vmax.f32 %v631_v11, 0.0  ;;  %v899_v20 = vmax.f32 %v759_v12, 0.0  ;;  %v634_v21 = vadd.f32 %v1607_v17, %v2045_v40  ;;  %v762_v22 = vadd.f32 %v1639_v18, %v2045_v40  ;;  %v625_v23 = vpop.f32.mrb[7].mxu0  ;;  %v753_v24 = vpop.f32.mrb[7].mxu1 }
 0x133   : > { %v865_v25 = vmax.f32 %v623_v15, 0.0  ;;  %v897_v26 = vmax.f32 %v751_v16, 0.0  ;;  %v626_v27 = vadd.f32 %v2045_v40, %v625_v23  ;;  %v754_v28 = vadd.f32 %v2045_v40, %v753_v24 }
 0x134   : > { %v1486_v29 = vpack.c.bf16 %v867_v19, %v867_v19  ;;  %v1518_v30 = vpack.c.bf16 %v899_v20, %v899_v20  ;;  %v868_v31 = vmax.f32 %v634_v21, 0.0  ;;  %v900_v32 = vmax.f32 %v762_v22, 0.0 }
 0x135   : > { %v1484_v33 = vpack.c.bf16 %v865_v25, %v865_v25  ;;  %v1516_v34 = vpack.c.bf16 %v897_v26, %v897_v26  ;;  %v866_v35 = vmax.f32 %v626_v27, 0.0  ;;  %v898_v36 = vmax.f32 %v754_v28, 0.0 }
 0x136   : > { %1188 = vst.msk [vmem:[%s2056_s10 + $0x18] sm:$0xf] %vm1181_vm0, %v1486_v29  ;;  %1220 = vst.msk [vmem:[%s2056_s10 + $0x98] sm:$0xf] %vm1181_vm0, %v1518_v30  ;;  %v1487_v37 = vpack.c.bf16 %v868_v31, %v868_v31  ;;  %v1519_v38 = vpack.c.bf16 %v900_v32, %v900_v32 }
 0x137   : > { %1186 = vst.msk [vmem:[%s2056_s10 + $0x10] sm:$0xf] %vm1181_vm0, %v1484_v33  ;;  %1218 = vst.msk [vmem:[%s2056_s10 + $0x90] sm:$0xf] %vm1181_vm0, %v1516_v34  ;;  %v1485_v39 = vpack.c.bf16 %v866_v35, %v866_v35  ;;  %v1517_v41 = vpack.c.bf16 %v898_v36, %v898_v36  ;;  %v1610_v42 = vpop.f32.mrb[8].mxu0  ;;  %v1642_v43 = vpop.f32.mrb[8].mxu1 }
 0x138   : > { %1189 = vst.msk [vmem:[%s2056_s10 + $0x1c] sm:$0xf] %vm1181_vm0, %v1487_v37  ;;  %1221 = vst.msk [vmem:[%s2056_s10 + $0x9c] sm:$0xf] %vm1181_vm0, %v1519_v38  ;;  %v647_v44 = vadd.f32 %v1610_v42, %v2045_v40  ;;  %v775_v45 = vadd.f32 %v1642_v43, %v2045_v40  ;;  %v638_v46 = vpop.f32.mrb[9].mxu0  ;;  %v766_v47 = vpop.f32.mrb[9].mxu1 }
 0x139   : > { %1187 = vst.msk [vmem:[%s2056_s10 + $0x14] sm:$0xf] %vm1181_vm0, %v1485_v39  ;;  %1219 = vst.msk [vmem:[%s2056_s10 + $0x94] sm:$0xf] %vm1181_vm0, %v1517_v41  ;;  %v639_v48 = vadd.f32 %v2045_v40, %v638_v46  ;;  %v767_v49 = vadd.f32 %v2045_v40, %v766_v47  ;;  %v1611_v50 = vpop.f32.mrb[10].mxu0  ;;  %v1643_v51 = vpop.f32.mrb[10].mxu1 }
 0x13a   : > { %v871_v52 = vmax.f32 %v647_v44, 0.0  ;;  %v903_v53 = vmax.f32 %v775_v45, 0.0  ;;  %v650_v54 = vadd.f32 %v1611_v50, %v2045_v40  ;;  %v778_v55 = vadd.f32 %v1643_v51, %v2045_v40  ;;  %v641_v56 = vpop.f32.mrb[11].mxu0  ;;  %v769_v57 = vpop.f32.mrb[11].mxu1 }
 0x13b   : > { %v869_v58 = vmax.f32 %v639_v48, 0.0  ;;  %v901_v59 = vmax.f32 %v767_v49, 0.0  ;;  %v642_v60 = vadd.f32 %v2045_v40, %v641_v56  ;;  %v770_v61 = vadd.f32 %v2045_v40, %v769_v57 }
 0x13c   : > { %v1490_v62 = vpack.c.bf16 %v871_v52, %v871_v52  ;;  %v1522_v63 = vpack.c.bf16 %v903_v53, %v903_v53  ;;  %v872_v0 = vmax.f32 %v650_v54, 0.0  ;;  %v904_v1 = vmax.f32 %v778_v55, 0.0 }
 0x13d   : > { %v1488_v2 = vpack.c.bf16 %v869_v58, %v869_v58  ;;  %v1520_v3 = vpack.c.bf16 %v901_v59, %v901_v59  ;;  %v870_v4 = vmax.f32 %v642_v60, 0.0  ;;  %v902_v5 = vmax.f32 %v770_v61, 0.0 }
 0x13e   : > { %1192 = vst.msk [vmem:[%s2056_s10 + $0x28] sm:$0xf] %vm1181_vm0, %v1490_v62  ;;  %1224 = vst.msk [vmem:[%s2056_s10 + $0xa8] sm:$0xf] %vm1181_vm0, %v1522_v63  ;;  %v1491_v6 = vpack.c.bf16 %v872_v0, %v872_v0  ;;  %v1523_v7 = vpack.c.bf16 %v904_v1, %v904_v1 }
 0x13f   : > { %1190 = vst.msk [vmem:[%s2056_s10 + $0x20] sm:$0xf] %vm1181_vm0, %v1488_v2  ;;  %1222 = vst.msk [vmem:[%s2056_s10 + $0xa0] sm:$0xf] %vm1181_vm0, %v1520_v3  ;;  %v1489_v8 = vpack.c.bf16 %v870_v4, %v870_v4  ;;  %v1521_v9 = vpack.c.bf16 %v902_v5, %v902_v5  ;;  %v1614_v10 = vpop.f32.mrb[12].mxu0  ;;  %v1646_v11 = vpop.f32.mrb[12].mxu1 }
 0x140   : > { %1193 = vst.msk [vmem:[%s2056_s10 + $0x2c] sm:$0xf] %vm1181_vm0, %v1491_v6  ;;  %1225 = vst.msk [vmem:[%s2056_s10 + $0xac] sm:$0xf] %vm1181_vm0, %v1523_v7  ;;  %v663_v12 = vadd.f32 %v1614_v10, %v2045_v40  ;;  %v791_v13 = vadd.f32 %v1646_v11, %v2045_v40  ;;  %v654_v14 = vpop.f32.mrb[13].mxu0  ;;  %v782_v15 = vpop.f32.mrb[13].mxu1 }
 0x141   : > { %1191 = vst.msk [vmem:[%s2056_s10 + $0x24] sm:$0xf] %vm1181_vm0, %v1489_v8  ;;  %1223 = vst.msk [vmem:[%s2056_s10 + $0xa4] sm:$0xf] %vm1181_vm0, %v1521_v9  ;;  %v655_v16 = vadd.f32 %v2045_v40, %v654_v14  ;;  %v783_v17 = vadd.f32 %v2045_v40, %v782_v15  ;;  %v1615_v18 = vpop.f32.mrb[14].mxu0  ;;  %v1647_v19 = vpop.f32.mrb[14].mxu1 }
 0x142   : > { %v875_v20 = vmax.f32 %v663_v12, 0.0  ;;  %v907_v21 = vmax.f32 %v791_v13, 0.0  ;;  %v666_v22 = vadd.f32 %v1615_v18, %v2045_v40  ;;  %v794_v23 = vadd.f32 %v1647_v19, %v2045_v40  ;;  %v657_v24 = vpop.f32.mrb[15].mxu0  ;;  %v785_v25 = vpop.f32.mrb[15].mxu1 }
 0x143   : > { %v873_v26 = vmax.f32 %v655_v16, 0.0  ;;  %v905_v27 = vmax.f32 %v783_v17, 0.0  ;;  %v658_v28 = vadd.f32 %v2045_v40, %v657_v24  ;;  %v786_v29 = vadd.f32 %v2045_v40, %v785_v25 }
 0x144   : > { %v1494_v30 = vpack.c.bf16 %v875_v20, %v875_v20  ;;  %v1526_v31 = vpack.c.bf16 %v907_v21, %v907_v21  ;;  %v876_v32 = vmax.f32 %v666_v22, 0.0  ;;  %v908_v33 = vmax.f32 %v794_v23, 0.0 }
 0x145   : > { %v1492_v34 = vpack.c.bf16 %v873_v26, %v873_v26  ;;  %v1524_v35 = vpack.c.bf16 %v905_v27, %v905_v27  ;;  %v874_v36 = vmax.f32 %v658_v28, 0.0  ;;  %v906_v37 = vmax.f32 %v786_v29, 0.0 }
 0x146   : > { %1196 = vst.msk [vmem:[%s2056_s10 + $0x38] sm:$0xf] %vm1181_vm0, %v1494_v30  ;;  %1228 = vst.msk [vmem:[%s2056_s10 + $0xb8] sm:$0xf] %vm1181_vm0, %v1526_v31  ;;  %v1495_v38 = vpack.c.bf16 %v876_v32, %v876_v32  ;;  %v1527_v39 = vpack.c.bf16 %v908_v33, %v908_v33 }
 0x147   : > { %1194 = vst.msk [vmem:[%s2056_s10 + $0x30] sm:$0xf] %vm1181_vm0, %v1492_v34  ;;  %1226 = vst.msk [vmem:[%s2056_s10 + $0xb0] sm:$0xf] %vm1181_vm0, %v1524_v35  ;;  %v1493_v41 = vpack.c.bf16 %v874_v36, %v874_v36  ;;  %v1525_v42 = vpack.c.bf16 %v906_v37, %v906_v37  ;;  %v1618_v43 = vpop.f32.mrb[16].mxu0  ;;  %v1650_v44 = vpop.f32.mrb[16].mxu1 }
 0x148   : > { %1197 = vst.msk [vmem:[%s2056_s10 + $0x3c] sm:$0xf] %vm1181_vm0, %v1495_v38  ;;  %1229 = vst.msk [vmem:[%s2056_s10 + $0xbc] sm:$0xf] %vm1181_vm0, %v1527_v39  ;;  %v679_v45 = vadd.f32 %v1618_v43, %v2045_v40  ;;  %v807_v46 = vadd.f32 %v1650_v44, %v2045_v40  ;;  %v670_v47 = vpop.f32.mrb[17].mxu0  ;;  %v798_v48 = vpop.f32.mrb[17].mxu1 }
 0x149   : > { %1195 = vst.msk [vmem:[%s2056_s10 + $0x34] sm:$0xf] %vm1181_vm0, %v1493_v41  ;;  %1227 = vst.msk [vmem:[%s2056_s10 + $0xb4] sm:$0xf] %vm1181_vm0, %v1525_v42  ;;  %v671_v49 = vadd.f32 %v2045_v40, %v670_v47  ;;  %v799_v50 = vadd.f32 %v2045_v40, %v798_v48  ;;  %v1619_v51 = vpop.f32.mrb[18].mxu0  ;;  %v1651_v52 = vpop.f32.mrb[18].mxu1 }
 0x14a   : > { %v879_v53 = vmax.f32 %v679_v45, 0.0  ;;  %v911_v54 = vmax.f32 %v807_v46, 0.0  ;;  %v682_v55 = vadd.f32 %v1619_v51, %v2045_v40  ;;  %v810_v56 = vadd.f32 %v1651_v52, %v2045_v40  ;;  %v673_v57 = vpop.f32.mrb[19].mxu0  ;;  %v801_v58 = vpop.f32.mrb[19].mxu1 }
 0x14b   : > { %v877_v59 = vmax.f32 %v671_v49, 0.0  ;;  %v909_v60 = vmax.f32 %v799_v50, 0.0  ;;  %v674_v61 = vadd.f32 %v2045_v40, %v673_v57  ;;  %v802_v62 = vadd.f32 %v2045_v40, %v801_v58 }
 0x14c   : > { %v1498_v63 = vpack.c.bf16 %v879_v53, %v879_v53  ;;  %v1530_v0 = vpack.c.bf16 %v911_v54, %v911_v54  ;;  %v880_v1 = vmax.f32 %v682_v55, 0.0  ;;  %v912_v2 = vmax.f32 %v810_v56, 0.0 }
 0x14d   : > { %v1496_v3 = vpack.c.bf16 %v877_v59, %v877_v59  ;;  %v1528_v4 = vpack.c.bf16 %v909_v60, %v909_v60  ;;  %v878_v5 = vmax.f32 %v674_v61, 0.0  ;;  %v910_v6 = vmax.f32 %v802_v62, 0.0 }
 0x14e   : > { %1200 = vst.msk [vmem:[%s2056_s10 + $0x48] sm:$0xf] %vm1181_vm0, %v1498_v63  ;;  %1232 = vst.msk [vmem:[%s2056_s10 + $0xc8] sm:$0xf] %vm1181_vm0, %v1530_v0  ;;  %v1499_v7 = vpack.c.bf16 %v880_v1, %v880_v1  ;;  %v1531_v8 = vpack.c.bf16 %v912_v2, %v912_v2 }
 0x14f   : > { %1198 = vst.msk [vmem:[%s2056_s10 + $0x40] sm:$0xf] %vm1181_vm0, %v1496_v3  ;;  %1230 = vst.msk [vmem:[%s2056_s10 + $0xc0] sm:$0xf] %vm1181_vm0, %v1528_v4  ;;  %v1497_v9 = vpack.c.bf16 %v878_v5, %v878_v5  ;;  %v1529_v10 = vpack.c.bf16 %v910_v6, %v910_v6  ;;  %v1622_v11 = vpop.f32.mrb[20].mxu0  ;;  %v1654_v12 = vpop.f32.mrb[20].mxu1 }
 0x150   : > { %1201 = vst.msk [vmem:[%s2056_s10 + $0x4c] sm:$0xf] %vm1181_vm0, %v1499_v7  ;;  %1233 = vst.msk [vmem:[%s2056_s10 + $0xcc] sm:$0xf] %vm1181_vm0, %v1531_v8  ;;  %v695_v13 = vadd.f32 %v1622_v11, %v2045_v40  ;;  %v823_v14 = vadd.f32 %v1654_v12, %v2045_v40  ;;  %v686_v15 = vpop.f32.mrb[21].mxu0  ;;  %v814_v16 = vpop.f32.mrb[21].mxu1 }
 0x151   : > { %1199 = vst.msk [vmem:[%s2056_s10 + $0x44] sm:$0xf] %vm1181_vm0, %v1497_v9  ;;  %1231 = vst.msk [vmem:[%s2056_s10 + $0xc4] sm:$0xf] %vm1181_vm0, %v1529_v10  ;;  %v687_v17 = vadd.f32 %v2045_v40, %v686_v15  ;;  %v815_v18 = vadd.f32 %v2045_v40, %v814_v16  ;;  %v1623_v19 = vpop.f32.mrb[22].mxu0  ;;  %v1655_v20 = vpop.f32.mrb[22].mxu1 }
 0x152   : > { %v883_v21 = vmax.f32 %v695_v13, 0.0  ;;  %v915_v22 = vmax.f32 %v823_v14, 0.0  ;;  %v698_v23 = vadd.f32 %v1623_v19, %v2045_v40  ;;  %v826_v24 = vadd.f32 %v1655_v20, %v2045_v40  ;;  %v689_v25 = vpop.f32.mrb[23].mxu0  ;;  %v817_v26 = vpop.f32.mrb[23].mxu1 }
 0x153   : > { %v881_v27 = vmax.f32 %v687_v17, 0.0  ;;  %v913_v28 = vmax.f32 %v815_v18, 0.0  ;;  %v690_v29 = vadd.f32 %v2045_v40, %v689_v25  ;;  %v818_v30 = vadd.f32 %v2045_v40, %v817_v26 }
 0x154   : > { %v1502_v31 = vpack.c.bf16 %v883_v21, %v883_v21  ;;  %v1534_v32 = vpack.c.bf16 %v915_v22, %v915_v22  ;;  %v884_v33 = vmax.f32 %v698_v23, 0.0  ;;  %v916_v34 = vmax.f32 %v826_v24, 0.0 }
 0x155   : > { %v1500_v35 = vpack.c.bf16 %v881_v27, %v881_v27  ;;  %v1532_v36 = vpack.c.bf16 %v913_v28, %v913_v28  ;;  %v882_v37 = vmax.f32 %v690_v29, 0.0  ;;  %v914_v38 = vmax.f32 %v818_v30, 0.0 }
 0x156   : > { %1204 = vst.msk [vmem:[%s2056_s10 + $0x58] sm:$0xf] %vm1181_vm0, %v1502_v31  ;;  %1236 = vst.msk [vmem:[%s2056_s10 + $0xd8] sm:$0xf] %vm1181_vm0, %v1534_v32  ;;  %v1503_v39 = vpack.c.bf16 %v884_v33, %v884_v33  ;;  %v1535_v41 = vpack.c.bf16 %v916_v34, %v916_v34 }
 0x157   : > { %1202 = vst.msk [vmem:[%s2056_s10 + $0x50] sm:$0xf] %vm1181_vm0, %v1500_v35  ;;  %1234 = vst.msk [vmem:[%s2056_s10 + $0xd0] sm:$0xf] %vm1181_vm0, %v1532_v36  ;;  %v1501_v42 = vpack.c.bf16 %v882_v37, %v882_v37  ;;  %v1533_v43 = vpack.c.bf16 %v914_v38, %v914_v38  ;;  %v1626_v44 = vpop.f32.mrb[24].mxu0  ;;  %v1658_v45 = vpop.f32.mrb[24].mxu1 }
 0x158   : > { %1205 = vst.msk [vmem:[%s2056_s10 + $0x5c] sm:$0xf] %vm1181_vm0, %v1503_v39  ;;  %1237 = vst.msk [vmem:[%s2056_s10 + $0xdc] sm:$0xf] %vm1181_vm0, %v1535_v41  ;;  %v711_v46 = vadd.f32 %v1626_v44, %v2045_v40  ;;  %v839_v47 = vadd.f32 %v1658_v45, %v2045_v40  ;;  %v702_v48 = vpop.f32.mrb[25].mxu0  ;;  %v830_v49 = vpop.f32.mrb[25].mxu1 }
 0x159   : > { %1203 = vst.msk [vmem:[%s2056_s10 + $0x54] sm:$0xf] %vm1181_vm0, %v1501_v42  ;;  %1235 = vst.msk [vmem:[%s2056_s10 + $0xd4] sm:$0xf] %vm1181_vm0, %v1533_v43  ;;  %v703_v50 = vadd.f32 %v2045_v40, %v702_v48  ;;  %v831_v51 = vadd.f32 %v2045_v40, %v830_v49  ;;  %v1627_v52 = vpop.f32.mrb[26].mxu0  ;;  %v1659_v53 = vpop.f32.mrb[26].mxu1 }
 0x15a   : > { %v887_v54 = vmax.f32 %v711_v46, 0.0  ;;  %v919_v55 = vmax.f32 %v839_v47, 0.0  ;;  %v714_v56 = vadd.f32 %v1627_v52, %v2045_v40  ;;  %v842_v57 = vadd.f32 %v1659_v53, %v2045_v40  ;;  %v705_v58 = vpop.f32.mrb[27].mxu0  ;;  %v833_v59 = vpop.f32.mrb[27].mxu1 }
 0x15b   : > { %v885_v60 = vmax.f32 %v703_v50, 0.0  ;;  %v917_v61 = vmax.f32 %v831_v51, 0.0  ;;  %v706_v62 = vadd.f32 %v2045_v40, %v705_v58  ;;  %v834_v63 = vadd.f32 %v2045_v40, %v833_v59 }
 0x15c   : > { %v1506_v0 = vpack.c.bf16 %v887_v54, %v887_v54  ;;  %v1538_v1 = vpack.c.bf16 %v919_v55, %v919_v55  ;;  %v888_v2 = vmax.f32 %v714_v56, 0.0  ;;  %v920_v3 = vmax.f32 %v842_v57, 0.0 }
 0x15d   : > { %v1504_v4 = vpack.c.bf16 %v885_v60, %v885_v60  ;;  %v1536_v5 = vpack.c.bf16 %v917_v61, %v917_v61  ;;  %v886_v6 = vmax.f32 %v706_v62, 0.0  ;;  %v918_v7 = vmax.f32 %v834_v63, 0.0 }
 0x15e   : > { %1208 = vst.msk [vmem:[%s2056_s10 + $0x68] sm:$0xf] %vm1181_vm0, %v1506_v0  ;;  %1240 = vst.msk [vmem:[%s2056_s10 + $0xe8] sm:$0xf] %vm1181_vm0, %v1538_v1  ;;  %v1507_v8 = vpack.c.bf16 %v888_v2, %v888_v2  ;;  %v1539_v9 = vpack.c.bf16 %v920_v3, %v920_v3 }
 0x15f   : > { %1206 = vst.msk [vmem:[%s2056_s10 + $0x60] sm:$0xf] %vm1181_vm0, %v1504_v4  ;;  %1238 = vst.msk [vmem:[%s2056_s10 + $0xe0] sm:$0xf] %vm1181_vm0, %v1536_v5  ;;  %v1505_v10 = vpack.c.bf16 %v886_v6, %v886_v6  ;;  %v1537_v11 = vpack.c.bf16 %v918_v7, %v918_v7  ;;  %v1630_v12 = vpop.f32.mrb[28].mxu0  ;;  %v1662_v13 = vpop.f32.mrb[28].mxu1 }
 0x160   : > { %1209 = vst.msk [vmem:[%s2056_s10 + $0x6c] sm:$0xf] %vm1181_vm0, %v1507_v8  ;;  %1241 = vst.msk [vmem:[%s2056_s10 + $0xec] sm:$0xf] %vm1181_vm0, %v1539_v9  ;;  %v727_v14 = vadd.f32 %v1630_v12, %v2045_v40  ;;  %v855_v15 = vadd.f32 %v1662_v13, %v2045_v40  ;;  %v718_v16 = vpop.f32.mrb[29].mxu0  ;;  %v846_v17 = vpop.f32.mrb[29].mxu1 }
 0x161   : > { %1207 = vst.msk [vmem:[%s2056_s10 + $0x64] sm:$0xf] %vm1181_vm0, %v1505_v10  ;;  %1239 = vst.msk [vmem:[%s2056_s10 + $0xe4] sm:$0xf] %vm1181_vm0, %v1537_v11  ;;  %v719_v18 = vadd.f32 %v2045_v40, %v718_v16  ;;  %v847_v19 = vadd.f32 %v2045_v40, %v846_v17  ;;  %v1631_v20 = vpop.f32.mrb[30].mxu0  ;;  %v1663_v21 = vpop.f32.mrb[30].mxu1 }
 0x162   : > { %v891_v22 = vmax.f32 %v727_v14, 0.0  ;;  %v923_v23 = vmax.f32 %v855_v15, 0.0  ;;  %v730_v24 = vadd.f32 %v1631_v20, %v2045_v40  ;;  %v858_v25 = vadd.f32 %v1663_v21, %v2045_v40  ;;  %v721_v26 = vpop.f32.mrb[31].mxu0  ;;  %v849_v27 = vpop.f32.mrb[31].mxu1 }
 0x163   : > { %v889_v28 = vmax.f32 %v719_v18, 0.0  ;;  %v921_v29 = vmax.f32 %v847_v19, 0.0  ;;  %v722_v30 = vadd.f32 %v2045_v40, %v721_v26  ;;  %v850_v31 = vadd.f32 %v2045_v40, %v849_v27 }
 0x164   : > { %v1510_v32 = vpack.c.bf16 %v891_v22, %v891_v22  ;;  %v1542_v33 = vpack.c.bf16 %v923_v23, %v923_v23  ;;  %v892_v34 = vmax.f32 %v730_v24, 0.0  ;;  %v924_v35 = vmax.f32 %v858_v25, 0.0 }
 0x165   : > { %v1508_v36 = vpack.c.bf16 %v889_v28, %v889_v28  ;;  %v1540_v37 = vpack.c.bf16 %v921_v29, %v921_v29  ;;  %v890_v38 = vmax.f32 %v722_v30, 0.0  ;;  %v922_v39 = vmax.f32 %v850_v31, 0.0 }
 0x166   : > { %1212 = vst.msk [vmem:[%s2056_s10 + $0x78] sm:$0xf] %vm1181_vm0, %v1510_v32  ;;  %1244 = vst.msk [vmem:[%s2056_s10 + $0xf8] sm:$0xf] %vm1181_vm0, %v1542_v33  ;;  %v1511_v41 = vpack.c.bf16 %v892_v34, %v892_v34  ;;  %v1543_v42 = vpack.c.bf16 %v924_v35, %v924_v35 }
 0x167   : > { %1210 = vst.msk [vmem:[%s2056_s10 + $0x70] sm:$0xf] %vm1181_vm0, %v1508_v36  ;;  %1242 = vst.msk [vmem:[%s2056_s10 + $0xf0] sm:$0xf] %vm1181_vm0, %v1540_v37  ;;  %v1509_v40 = vpack.c.bf16 %v890_v38, %v890_v38  ;;  %v1541_v43 = vpack.c.bf16 %v922_v39, %v922_v39 }
 0x168   : > { %1213 = vst.msk [vmem:[%s2056_s10 + $0x7c] sm:$0xf] %vm1181_vm0, %v1511_v41  ;;  %1245 = vst.msk [vmem:[%s2056_s10 + $0xfc] sm:$0xf] %vm1181_vm0, %v1543_v42 }
 0x169   : > { %1211 = vst.msk [vmem:[%s2056_s10 + $0x74] sm:$0xf] %vm1181_vm0, %v1509_v40  ;;  %1243 = vst.msk [vmem:[%s2056_s10 + $0xf4] sm:$0xf] %vm1181_vm0, %v1541_v43 }
 0x16a PF: > { %s16_s17 = sadd.s32 1, %s1857_s17   ;;  %s2269_s12 = smov %s1841_s13 }
 0x16b   : > { %p13_p9 = scmp.ge.s32.totalorder %s16_s17, 4   ;;  %s2270_s13 = smov %s1845_s14 }
 0x16c   : > { %s2271_s14 = smov %s1931_s24  ;;  %s2272_s15 = smov %s1853_s16 }
 0x16d   : > { %s2273_s16 = smov %s2275_s19  ;;  %15 = sbr.rel (!%p13_p9) target bundleno = 4 (0x4), region = 78 }
 0x174   :  { %1274 = vsyncpa [#allocation3], 1 }
 0x175   :  { %1276 = vsyncpa [#allocation3 + $0x1], 1 }

</bundles_post_ra>
